<compile_context>
chip_gen: v6e
topology: v6e:2x2x1
jax: 0.10.0
libtpu: 0.0.40
codegen_flags: <defaults>
</compile_context>

<pallas_src>
import jax
import jax.numpy as jnp
from jax import lax
from jax.experimental import pallas as pl
from jax.experimental.pallas import tpu as pltpu


_HIDDEN = 64
_MAX_TILE_B = 8192      # rows per grid step (multiple of 128); ~21 MiB VMEM/step
_SMALL_B = 256          # at or below this, a single full-batch block is cheapest


def _round_up(x, m):
    return ((x + m - 1) // m) * m


def _choose_tile(batch, max_tile_b):
    """Pick (tile_b, num_tiles) with no host-side padding.

    - Small batches: a single block covering the whole (possibly unaligned)
      batch; block dims equal to the array dims always satisfy the (8,128) rule.
    - Larger batches: tile_b is a multiple of 128 (8-aligned sublanes on the
      inputs, lane-dense output stores), chosen so the grid has at least two
      steps with an even count -- on v7x both TensorCores then get work.  The
      ragged last block is handled by Pallas' masked out-of-bounds reads/writes.
    """
    if batch <= _SMALL_B:
        return batch, 1
    num_tiles = max(2, pl.cdiv(batch, max_tile_b))
    if num_tiles % 2:
        num_tiles += 1                      # balanced split across v7x's 2 TCs
    tile_b = _round_up(pl.cdiv(batch, num_tiles), 128)
    return tile_b, pl.cdiv(batch, tile_b)


def _critic_kernel(s_ref, a_ref, w1s_ref, w1a_ref, b1_ref, w2_ref, b2_ref, o_ref):
    # fc1 without the concat:  cat([s, a]) @ W1^T == s @ W1s + a @ W1a.
    # Operands are bf16 (weights arrive pre-cast); accumulation is f32.
    s = s_ref[...].astype(jnp.bfloat16)
    a = a_ref[...].astype(jnp.bfloat16)
    h = jnp.dot(s, w1s_ref[...], preferred_element_type=jnp.float32)
    h = h + jnp.dot(a, w1a_ref[...], preferred_element_type=jnp.float32)
    h = jnp.maximum(h + b1_ref[...], 0.0)                      # (tile_b, 64) f32

    # Output layer: contract the 64-wide hidden dim against the single w2 row,
    # producing the lane-dense (1, tile_b) block written to the output.
    v = lax.dot_general(
        w2_ref[...], h.astype(jnp.bfloat16),                   # (1,64),(tile_b,64)
        dimension_numbers=(((1,), (1,)), ((), ())),
        preferred_element_type=jnp.float32,
    )                                                          # (1, tile_b)
    o_ref[...] = v + b2_ref[0, 0]                              # scalar bias (SMEM)


def critic_forward(state, action, params, *, max_tile_b=_MAX_TILE_B):
    """state: (B, state_dim), action: (B, action_dim) -> value: (B, 1)."""
    w1s, w1a, b1, w2, b2 = params
    state = jnp.asarray(state, jnp.float32)
    action = jnp.asarray(action, jnp.float32)
    B, state_dim = state.shape
    action_dim = action.shape[1]
    hidden = w1s.shape[1]

    # bf16 matmul operands (weights are tiny; cast once here).  Biases stay f32.
    w1s = w1s.astype(jnp.bfloat16)
    w1a = w1a.astype(jnp.bfloat16)
    w2 = w2.astype(jnp.bfloat16)
    b1 = b1.astype(jnp.float32)
    b2 = b2.astype(jnp.float32)

    tile_b, num_tiles = _choose_tile(B, max_tile_b)

    out = pl.pallas_call(
        _critic_kernel,
        out_shape=jax.ShapeDtypeStruct((1, B), jnp.float32),
        grid=(num_tiles,),
        in_specs=[
            # batch-tiled activations (last blocks may be masked/ragged)
            pl.BlockSpec((tile_b, state_dim), lambda i: (i, 0)),
            pl.BlockSpec((tile_b, action_dim), lambda i: (i, 0)),
            # weights / biases: constant index map -> stay resident in VMEM
            pl.BlockSpec((state_dim, hidden), lambda i: (0, 0)),
            pl.BlockSpec((action_dim, hidden), lambda i: (0, 0)),
            pl.BlockSpec((1, hidden), lambda i: (0, 0)),
            pl.BlockSpec((1, hidden), lambda i: (0, 0)),
            # scalar output bias lives in SMEM
            pl.BlockSpec(memory_space=pltpu.MemorySpace.SMEM),
        ],
        # lane-dense output: each step writes a (1, tile_b) slab
        out_specs=pl.BlockSpec((1, tile_b), lambda i: (0, i)),
        compiler_params=pltpu.CompilerParams(
            dimension_semantics=("parallel",),   # v7x: batch tiles split over 2 TCs
            vmem_limit_bytes=40 * 1024 * 1024,   # enough even at tile_b = 8192
        ),
    )(state, action, w1s, w1a, b1, w2, b2)

    return out.reshape(B, 1)


def init_critic_params(key, state_dim, action_dim):
    """nn.Linear default init, U(-1/sqrt(fan_in), +1/sqrt(fan_in)).

    fc1 weight is stored pre-transposed and split by input:
      w1s: (state_dim, 64), w1a: (action_dim, 64)
    so cat([s, a]) @ W1^T == s @ w1s + a @ w1a.  The PyTorch module hard-codes
    Linear(state_dim + 9, 64); pass action_dim=9 to reproduce it exactly.
    """
    hidden = _HIDDEN
    fan_in1 = state_dim + action_dim
    bound1 = 1.0 / (fan_in1 ** 0.5)
    bound2 = 1.0 / (hidden ** 0.5)
    k1, k2, k3, k4, k5 = jax.random.split(key, 5)
    w1s = jax.random.uniform(k1, (state_dim, hidden), jnp.float32, -bound1, bound1)
    w1a = jax.random.uniform(k2, (action_dim, hidden), jnp.float32, -bound1, bound1)
    b1 = jax.random.uniform(k3, (1, hidden), jnp.float32, -bound1, bound1)
    w2 = jax.random.uniform(k4, (1, hidden), jnp.float32, -bound2, bound2)  # out weight row
    b2 = jax.random.uniform(k5, (1, 1), jnp.float32, -bound2, bound2)
    return (w1s, w1a, b1, w2, b2)


def critic_reference(state, action, params):
    """Pure-JAX f32 reference reproducing the PyTorch forward (with the concat)."""
    w1s, w1a, b1, w2, b2 = params
    w1 = jnp.concatenate([w1s, w1a], axis=0)               # (state+action, 64)
    x = jnp.concatenate([state, action], axis=-1)
    h = jnp.maximum(x @ w1 + b1, 0.0)
    return h @ w2.T + b2


if __name__ == "__main__":
    state_dim = 24
    action_dim = 9          # fc1 expects state_dim + 9
    batch = 8

    key = jax.random.PRNGKey(0)
    kp, ks, ka = jax.random.split(key, 3)

    params = init_critic_params(kp, state_dim, action_dim)
    state = jax.random.normal(ks, (batch, state_dim), jnp.float32)
    action = jax.random.normal(ka, (batch, action_dim), jnp.float32)

    # bf16 MXU operands => compare vs the f32 reference with ~1e-2 tolerances.
    value = jax.block_until_ready(critic_forward(state, action, params))
    ref = critic_reference(state, action, params)
    assert value.shape == (batch, 1)
    assert jnp.allclose(value, ref, atol=5e-2, rtol=5e-2), "mismatch vs reference (small batch)"

    # Also exercise the multi-tile path with a ragged, unaligned batch:
    # B=1037 > 256 -> 2 tiles of 640 rows; the second block is partially
    # out-of-bounds and relies on masked reads/writes (no host-side padding).
    big_b = 1037
    s2 = jax.random.normal(ks, (big_b, state_dim), jnp.float32)
    a2 = jax.random.normal(ka, (big_b, action_dim), jnp.float32)
    v2 = jax.block_until_ready(critic_forward(s2, a2, params))
    r2 = critic_reference(s2, a2, params)
    assert v2.shape == (big_b, 1)
    assert jnp.allclose(v2, r2, atol=5e-2, rtol=5e-2), "mismatch vs reference (tiled batch)"

    print("KERNEL_OK")
</pallas_src>

<mosaic_0001>
module attributes {stable_mosaic.version = 11 : i64} {
  func.func @_critic_kernel(%arg0: i32, %arg1: memref<8x24xf32, #tpu.memory_space<vmem>>, %arg2: memref<8x9xf32, #tpu.memory_space<vmem>>, %arg3: memref<24x64xbf16, #tpu.memory_space<vmem>>, %arg4: memref<9x64xbf16, #tpu.memory_space<vmem>>, %arg5: memref<1x64xf32, #tpu.memory_space<vmem>>, %arg6: memref<1x64xbf16, #tpu.memory_space<vmem>>, %arg7: memref<1x1xf32, #tpu.memory_space<smem>>, %arg8: memref<1x8xf32, #tpu.memory_space<vmem>>) attributes {dimension_semantics = [#tpu.dimension_semantics<parallel>], iteration_bounds = array<i64: 1>, scalar_prefetch = 0 : i64, scratch_operands = 0 : i64, tpu.core_type = #tpu.core_type<tc>, window_params = [{transform_indices = @transform_0, window_bounds = array<i64: 8, 24>}, {transform_indices = @transform_1, window_bounds = array<i64: 8, 9>}, {pipeline_mode = #tpu.pipeline_mode<synchronous>, transform_indices = @transform_2, window_bounds = array<i64: 24, 64>}, {pipeline_mode = #tpu.pipeline_mode<synchronous>, transform_indices = @transform_3, window_bounds = array<i64: 9, 64>}, {pipeline_mode = #tpu.pipeline_mode<synchronous>, transform_indices = @transform_4, window_bounds = array<i64: 1, 64>}, {pipeline_mode = #tpu.pipeline_mode<synchronous>, transform_indices = @transform_5, window_bounds = array<i64: 1, 64>}, {transform_indices = @transform_6, window_bounds = array<i64: 1, 1>}, {transform_indices = @transform_7, window_bounds = array<i64: 1, 8>}]} {
    %c0 = arith.constant 0 : index
    %c0_0 = arith.constant 0 : index
    %0 = vector.load %arg1[%c0, %c0_0] : memref<8x24xf32, #tpu.memory_space<vmem>>, vector<8x24xf32>
    %1 = arith.truncf %0 : vector<8x24xf32> to vector<8x24xbf16>
    %c0_1 = arith.constant 0 : index
    %c0_2 = arith.constant 0 : index
    %2 = vector.load %arg2[%c0_1, %c0_2] : memref<8x9xf32, #tpu.memory_space<vmem>>, vector<8x9xf32>
    %3 = arith.truncf %2 : vector<8x9xf32> to vector<8x9xbf16>
    %c0_3 = arith.constant 0 : index
    %c0_4 = arith.constant 0 : index
    %4 = vector.load %arg3[%c0_3, %c0_4] : memref<24x64xbf16, #tpu.memory_space<vmem>>, vector<24x64xbf16>
    %cst = arith.constant dense<0.000000e+00> : vector<8x64xf32>
    %5 = tpu.matmul %1, %4, %cst {dimension_numbers = #tpu.dot_dimension_numbers<[1], [0], [0], [1], [0, 0, 1, 1], [], []>} : vector<8x24xbf16>, vector<24x64xbf16>, vector<8x64xf32> -> vector<8x64xf32>
    %c0_5 = arith.constant 0 : index
    %c0_6 = arith.constant 0 : index
    %6 = vector.load %arg4[%c0_5, %c0_6] : memref<9x64xbf16, #tpu.memory_space<vmem>>, vector<9x64xbf16>
    %cst_7 = arith.constant dense<0.000000e+00> : vector<8x64xf32>
    %7 = tpu.matmul %3, %6, %cst_7 {dimension_numbers = #tpu.dot_dimension_numbers<[1], [0], [0], [1], [0, 0, 1, 1], [], []>} : vector<8x9xbf16>, vector<9x64xbf16>, vector<8x64xf32> -> vector<8x64xf32>
    %8 = arith.addf %5, %7 : vector<8x64xf32>
    %c0_8 = arith.constant 0 : index
    %c0_9 = arith.constant 0 : index
    %9 = vector.load %arg5[%c0_8, %c0_9] : memref<1x64xf32, #tpu.memory_space<vmem>>, vector<1x64xf32>
    %10 = vector.broadcast %9 : vector<1x64xf32> to vector<8x64xf32>
    %11 = arith.addf %8, %10 : vector<8x64xf32>
    %cst_10 = arith.constant 0.000000e+00 : f32
    %12 = vector.broadcast %cst_10 : f32 to vector<8x64xf32>
    %13 = arith.maximumf %11, %12 : vector<8x64xf32>
    %c0_11 = arith.constant 0 : index
    %c0_12 = arith.constant 0 : index
    %14 = vector.load %arg6[%c0_11, %c0_12] : memref<1x64xbf16, #tpu.memory_space<vmem>>, vector<1x64xbf16>
    %15 = arith.truncf %13 : vector<8x64xf32> to vector<8x64xbf16>
    %cst_13 = arith.constant dense<0.000000e+00> : vector<1x8xf32>
    %16 = tpu.matmul %14, %15, %cst_13 {dimension_numbers = #tpu.dot_dimension_numbers<[1], [1], [0], [0], [0, 0, 1, 0], [], []>} : vector<1x64xbf16>, vector<8x64xbf16>, vector<1x8xf32> -> vector<1x8xf32>
    %c0_14 = arith.constant 0 : index
    %c0_15 = arith.constant 0 : index
    %17 = memref.load %arg7[%c0_14, %c0_15] : memref<1x1xf32, #tpu.memory_space<smem>>
    %18 = vector.broadcast %17 : f32 to vector<1x8xf32>
    %19 = arith.addf %16, %18 : vector<1x8xf32>
    %c0_16 = arith.constant 0 : index
    %c0_17 = arith.constant 0 : index
    %20 = vector.load %arg8[%c0_16, %c0_17] : memref<1x8xf32, #tpu.memory_space<vmem>>, vector<1x8xf32>
    tpu.vector_store %arg8[%c0_16, %c0_17], %19 {strides = array<i32>} : memref<1x8xf32, #tpu.memory_space<vmem>>, vector<1x8xf32>,
    return
  }
  func.func @transform_0(%arg0: i32) -> (i32, i32) {
    %c0_i32 = arith.constant 0 : i32
    %c0_i32_0 = arith.constant 0 : i32
    return %arg0, %c0_i32 : i32, i32
  }
  func.func @transform_1(%arg0: i32) -> (i32, i32) {
    %c0_i32 = arith.constant 0 : i32
    %c0_i32_0 = arith.constant 0 : i32
    return %arg0, %c0_i32 : i32, i32
  }
  func.func @transform_2(%arg0: i32) -> (i32, i32) {
    %c0_i32 = arith.constant 0 : i32
    %c0_i32_0 = arith.constant 0 : i32
    %c0_i32_1 = arith.constant 0 : i32
    return %c0_i32, %c0_i32_0 : i32, i32
  }
  func.func @transform_3(%arg0: i32) -> (i32, i32) {
    %c0_i32 = arith.constant 0 : i32
    %c0_i32_0 = arith.constant 0 : i32
    %c0_i32_1 = arith.constant 0 : i32
    return %c0_i32, %c0_i32_0 : i32, i32
  }
  func.func @transform_4(%arg0: i32) -> (i32, i32) {
    %c0_i32 = arith.constant 0 : i32
    %c0_i32_0 = arith.constant 0 : i32
    %c0_i32_1 = arith.constant 0 : i32
    return %c0_i32, %c0_i32_0 : i32, i32
  }
  func.func @transform_5(%arg0: i32) -> (i32, i32) {
    %c0_i32 = arith.constant 0 : i32
    %c0_i32_0 = arith.constant 0 : i32
    %c0_i32_1 = arith.constant 0 : i32
    return %c0_i32, %c0_i32_0 : i32, i32
  }
  func.func @transform_6(%arg0: i32) -> (i32, i32) {
    %c0_i32 = arith.constant 0 : i32
    %c0_i32_0 = arith.constant 0 : i32
    %c0_i32_1 = arith.constant 0 : i32
    return %c0_i32, %c0_i32_0 : i32, i32
  }
  func.func @transform_7(%arg0: i32) -> (i32, i32) {
    %c0_i32 = arith.constant 0 : i32
    %c0_i32_0 = arith.constant 0 : i32
    return %c0_i32, %arg0 : i32, i32
  }
}

</mosaic_0001>

<bundles_post_ra>
// kernel: tpu_custom_call.1
= control target key start
LH: loop header
LB: loop body
LE: loop exit
PB: predicated region body
PF: predicated region fallthrough
CT: control target
= control target key end

     0   :  { %13 = vsyncpa [#allocation4], 0  ;;  %s512_s0 = inlined_call_operand.hbm [shape: f32[8,24], index: 0, kind: input, shape index: {}]   ;;  %s513_s1 = inlined_call_operand.hbm [shape: f32[8,9], index: 1, kind: input, shape index: {}]   ;;  %s514_s2 = inlined_call_operand.hbm [shape: bf16[24,64], index: 2, kind: input, shape index: {}]   ;;  %s515_s3 = inlined_call_operand.hbm [shape: bf16[9,64], index: 3, kind: input, shape index: {}]   ;;  %s516_s4 = inlined_call_operand.vmem [shape: f32[1,64], index: 4, kind: input, shape index: {}]   ;;  %s517_s5 = inlined_call_operand.vmem [shape: bf16[1,64], index: 5, kind: input, shape index: {}]   ;;  %s518_s6 = inlined_call_operand.<no memory space> [shape: f32[1,1], index: 6, kind: input, shape index: {}]   ;;  %s519_s7 = inlined_call_operand.hbm [shape: f32[1,8], index: 7, kind: output, shape index: {}]  }
   0x1   :  { %14 = vsyncpa [#allocation7], 0 }
   0x2   :  { %15 = vsyncpa [#allocation10], 0 }
   0x3   :  { %16 = vsyncpa [#allocation5], 0  ;;  %s435_s24 = smov [#allocation6]   ;;  %s436_s26 = smov [#allocation3]  }
   0x4   :  { %s33_s25 = sshll.u32 %s435_s24, 4  ;;  %s23_s27 = sshll.u32 %s436_s26, 4  ;;  %s34_s25 = int_to_ptr.vmem [resolvable:$true] %s33_s25  ;;  %s24_s27 = int_to_ptr.vmem [resolvable:$true] %s23_s27 }
   0x5   :  { %s335_s28 = scalar_lea.vmem %s34_s25, 128  ;;  %p340_p1 = scmp.lt.s32.totalorder %s34_s25, %s34_s25 }
   0x6   :  { %p336_p0 = scmp.ne.s32.totalorder %s34_s25, %s335_s28  ;;  %p341_p2 = scmp.lt.s32.totalorder %s335_s28, %s335_s28 }
   0x8   :  { %p342_p3 = por %p341_p2, %p340_p1 }
   0xa   :  { %p343_p4 = pnand %p342_p3, %p336_p0 }
   0xc   :  { %346 = shalt.err (!%p343_p4)
}
   0xd   :  { %36 = dma.hbm_to_vmem [thread:$0]  %s513_s1, 128, %s34_s25, [#allocation7]  }
   0xe   :  { %s355_s8 = scalar_lea.vmem %s24_s27, 128  ;;  %p360_p6 = scmp.lt.s32.totalorder %s24_s27, %s24_s27 }
   0xf   :  { %p356_p5 = scmp.ne.s32.totalorder %s24_s27, %s355_s8  ;;  %p361_p7 = scmp.lt.s32.totalorder %s355_s8, %s355_s8 }
  0x11   :  { %p362_p8 = por %p361_p7, %p360_p6 }
  0x13   :  { %p363_p9 = pnand %p362_p8, %p356_p5 }
  0x15   :  { %366 = shalt.err (!%p363_p9)
}
  0x16   :  { %26 = dma.hbm_to_vmem [thread:$0]  %s512_s0, 128, %s24_s27, [#allocation4]  }
  0x17   :  { %s437_s11 = smov [#allocation8]  }
  0x18   :  { %s42_s12 = sshll.u32 %s437_s11, 4  ;;  %s43_s12 = int_to_ptr.vmem [resolvable:$true] %s42_s12 }
  0x19   :  { %s375_s13 = scalar_lea.vmem %s43_s12, 192  ;;  %p380_p11 = scmp.lt.s32.totalorder %s43_s12, %s43_s12 }
  0x1a   :  { %p376_p10 = scmp.ne.s32.totalorder %s43_s12, %s375_s13  ;;  %p381_p12 = scmp.lt.s32.totalorder %s375_s13, %s375_s13 }
  0x1c   :  { %p382_p13 = por %p381_p12, %p380_p11 }
  0x1e   :  { %p383_p0 = pnand %p382_p13, %p376_p10 }
  0x20   :  { %386 = shalt.err (!%p383_p0)
}
  0x21   :  { %s438_s1 = smov 64   ;;  %s439_s14 = smov 4  }
  0x22   :  { %48 = dma.hbm_to_vmem [thread:$0]  %s514_s2, 192, %s43_s12, [#allocation7], %s438_s1, %s438_s1, %s439_s14  }
  0x23   :  { %s440_s17 = smov [#allocation9]  }
  0x24   :  { %s54_s18 = sshll.u32 %s440_s17, 4  ;;  %s55_s18 = int_to_ptr.vmem [resolvable:$true] %s54_s18 }
  0x25   :  { %s395_s0 = scalar_lea.vmem %s55_s18, 128  ;;  %p400_p2 = scmp.lt.s32.totalorder %s55_s18, %s55_s18 }
  0x26   :  { %p396_p1 = scmp.ne.s32.totalorder %s55_s18, %s395_s0  ;;  %p401_p3 = scmp.lt.s32.totalorder %s395_s0, %s395_s0 }
  0x28   :  { %p402_p4 = por %p401_p3, %p400_p2 }
  0x2a   :  { %p403_p5 = pnand %p402_p4, %p396_p1 }
  0x2c   :  { %406 = shalt.err (!%p403_p5)
}
  0x2d   :  { %60 = dma.hbm_to_vmem [thread:$0]  %s515_s3, 128, %s55_s18, [#allocation10], %s438_s1, %s438_s1, %s439_s14  }
  0x2e   :  { %427 = dma.done.wait [#allocation4], 128  }
  0x2f   :  { %428 = vsyncadd [#allocation4], 4294967168 }
  0x30   :  { %429 = dma.done.wait [#allocation7], 320  }
  0x31   :  { %430 = vsyncadd [#allocation7], 4294966976 }
  0x32   :  { %431 = dma.done.wait [#allocation10], 128  }
  0x33   :  { %432 = vsyncadd [#allocation10], 4294967168  ;;  %vm98_vm0 = vcmask 1043456   ;;  %v441_v0 = vmov 0.0   ;;  %vm442_vm1 = vmmov 0   ;;  %v443_v1 = vmov 65535  }
  0x34   :  { %300 = vmatprep.subr.bf16.mxu1 %v441_v0  ;;  %294 = vmatprep.subr.bf16.mxu0 %v441_v0  ;;  %v100_v2 = vsel %vm98_vm0, 4294967295, %v443_v1  ;;  %vm99_vm2 = vcmask 1044480   ;;  %v324_v4 = vld [vmem:[#allocation8 + $0x8] ss:$0 sps:$4 sm:$0xff]   ;;  %v325_v5 = vld [vmem:[#allocation9] sm:$0x1f]   ;;  %v213_v28 = vstv %s518_s6 }
  0x35   :  { %296 = vmatprep.mubr.msk.bf16.mxu0 %vm442_vm1, %v441_v0  ;;  %304 = vmatprep.mubr.msk.bf16.mxu1 %vm442_vm1, %v441_v0  ;;  %v101_v3 = vsel %vm99_vm2, %v100_v2, 0  ;;  %v82_v6 = vld [vmem:[#allocation6] sm:$0xff]  ;;  %v159_v7 = vsel %vm98_vm0, %v324_v4, 0  ;;  %v326_v9 = vld [vmem:[#allocation8] sm:$0xff]   ;;  %v80_v10 = vld [vmem:[#allocation3] sm:$0xff]  ;;  %vm94_vm3 = vcmask 72704  }
  0x36   :  { %301 = vmatpush3.bf16.msra.mxu1 %v159_v7  ;;  %v103_v8 = vand.u32 %v325_v5, %v101_v3  ;;  %v83_v11 = vpack.c.bf16 %v82_v6, %v82_v6  ;;  %v81_v12 = vpack.c.bf16 %v80_v10, %v80_v10  ;;  %vm154_vm4 = vcmask 195584   ;;  %v285_v16 = vld [vmem:[%s516_s4] ss:$0 sm:$0xff]  ;;  %s444_s4 = smov [#allocation11]  }
  0x37   :  { %302 = vmatprep.subr.bf16.mxu1 %v441_v0  ;;  %vm214_vm5 = vcmask 523264   ;;  %v210_v27 = vld [vmem:[%s517_s5] sm:$0x1]  ;;  %s269_s25 = sshll.u32 %s444_s4, 4  ;;  %vm261_vm6 = vcmask 57344   ;;  %s270_s25 = int_to_ptr.vmem [resolvable:$true] %s269_s25 }
  0x38   :  { %295 = vmatpush3.bf16.msra.mxu0 %v103_v8  ;;  %s407_s26 = scalar_lea.vmem %s270_s25, 16  ;;  %s411_s27 = scalar_lea.vmem %s270_s25, 32 }
  0x39   :  { %308 = vmatprep.subr.bf16.mxu0 %v441_v0  ;;  %p408_p6 = scmp.ne.s32.totalorder %s270_s25, %s407_s26  ;;  %p412_p7 = scmp.lt.s32.totalorder %s270_s25, %s270_s25 }
  0x3a   :  { %303 = vmatpush3.bf16.msra.mxu1 %v326_v9  ;;  %p413_p8 = scmp.lt.s32.totalorder %s411_s27, %s407_s26 }
  0x3b   :  { %297 = vmatmul.mubr.msk.bf16.vlgmr.msra.gmra.mxu0 %vm94_vm3, %v83_v11 }
  0x3c   :  { %310 = vmatprep.mubr.msk.bf16.mxu0 %vm442_vm1, %v441_v0  ;;  %p414_p9 = por %p413_p8, %p412_p7 }
  0x3d   :  { %305 = vmatmul.mubr.msk.bf16.vlgmr.msra.gmra.mxu1 %vm154_vm4, %v81_v12 }
  0x3e   :  { %p415_p10 = pnand %p414_p9, %p408_p6 }
  0xfb   :  { %v139_v13 = vpop.f32.mrf.mxu0 }
  0xfd   :  { %v298_v14 = vpop.f32.mrf.mxu0  ;;  %v195_v15 = vpop.f32.mrf.mxu1 }
  0xfe   :  { %v196_v17 = vadd.f32 %v195_v15, %v139_v13 }
  0xff   :  { %v142_v18 = vpop.f32.mrf.mxu0  ;;  %v306_v19 = vpop.f32.mrf.mxu1 }
 0x100   :  { %v208_v20 = vadd.f32 %v285_v16, %v196_v17 }
 0x101   :  { %v299_v21 = vpop.f32.mrf.mxu0  ;;  %v198_v22 = vpop.f32.mrf.mxu1 }
 0x102   :  { %v209_v23 = vmax.f32 %v208_v20, 0.0 }
 0x103   :  { %v307_v24 = vpop.f32.mrf.mxu1 }
 0x104   :  { %v211_v25 = vpack.c.bf16 %v209_v23, %v209_v23 }
 0x106   :  { %v219_v26 = vsel %vm214_vm5, %v211_v25, 0 }
 0x107   :  { %309 = vmatpush3.bf16.xpose.msra.mxu0 %v219_v26 }
 0x10e   :  { %311 = vmatmul.mubr.msk.bf16.vlgmr.msra.gmra.mxu0 %vm214_vm5, %v210_v27 }
 0x1ce   :  { %v255_v29 = vpop.f32.mrf.mxu0 }
 0x1cf   :  { %v256_v30 = vadd.f32 %v255_v29, %v213_v28 }
 0x1d0   :  { %v312_v31 = vpop.f32.mrf.mxu0 }
 0x1d1   :  { %262 = vst.msk [vmem:[#allocation11] sm:$0x1] %vm261_vm6, %v256_v30 }
 0x1d2   :  { %v258_v32 = vpop.f32.mrf.mxu0 }
 0x1d3   :  { %418 = shalt.err (!%p415_p10)
}
 0x1d4   :  { %272 = dma.vmem_to_hbm [thread:$0]  %s270_s25, 16, %s519_s7, [#allocation5]   ;;  %v313_v33 = vpop.f32.mrf.mxu0 }
 0x1d5   :  { %433 = dma.done.wait [#allocation5], 16  }
 0x1d6   :  { %434 = vsyncadd [#allocation5], 4294967280 }
 0x1d7   :  { %276 = vsyncpa [#allocation4], 1 }
 0x1d8   :  { %277 = vsyncpa [#allocation7], 1 }
 0x1d9   :  { %278 = vsyncpa [#allocation10], 1 }
 0x1da   :  { %279 = vsyncpa [#allocation5], 1 }

</bundles_post_ra>
